<compile_context>
chip_gen: v7x
topology: tpu7x:2x2x1
jax: 0.10.0
libtpu: 0.0.40
codegen_flags: <defaults>
</compile_context>

<pallas_src>
import jax
import jax.numpy as jnp
from jax.experimental import pallas as pl
from jax.experimental.pallas import tpu as pltpu


def scse_kernel(x_ref, w1_ref, b1_ref, w2_ref, b2_ref, ws_ref, bs_ref, o_ref):
    """x_ref / o_ref: (Bt, C, HW) f32 blocks (HW on the lane axis)."""
    bt = x_ref.shape[0]
    inv_hw = 1.0 / x_ref.shape[2]

    # Hoist the tiny shared operands out of the per-batch loop.
    w1 = w1_ref[...]        # (Cm, C)
    b1 = b1_ref[...]        # (Cm, 1)
    w2 = w2_ref[...]        # (C, Cm)
    b2 = b2_ref[...]        # (C, 1)
    ws = ws_ref[...]        # (1, C)
    bs = bs_ref[0]          # scalar, from SMEM

    for b in range(bt):     # static unroll; bt is small (<= 8)
        xb = x_ref[b]       # (C, HW)

        # ---- cSE: global average pool (lane-axis reduction) + two tiny 1x1 convs ----
        mb = jnp.sum(xb, axis=-1, keepdims=True) * inv_hw                    # (C, 1)
        z1 = jnp.dot(w1, mb, preferred_element_type=jnp.float32) + b1        # (Cm, 1)
        z1 = jnp.maximum(z1, 0.0)                                            # ReLU
        z2 = jnp.dot(w2, z1, preferred_element_type=jnp.float32) + b2        # (C, 1)
        c_att = jax.nn.sigmoid(z2)                                           # (C, 1)

        # ---- sSE: lane-dense (1, C) @ (C, HW) matmul ----
        s = jnp.dot(ws, xb, preferred_element_type=jnp.float32) + bs         # (1, HW)
        s_att = jax.nn.sigmoid(s)                                            # (1, HW)

        # ---- combine: x * (c_att + s_att); c_att broadcasts over lanes, s_att over sublanes
        o_ref[b] = xb * (c_att + s_att)


def _pick_batch_tile(B, C, HW, target_bytes=2 << 20, max_bt=8):
    """Largest divisor of B (<= max_bt) whose x-block stays under ~target_bytes."""
    per = C * HW * 4
    bt = 1
    for cand in range(2, min(B, max_bt) + 1):
        if B % cand == 0 and cand * per <= target_bytes:
            bt = cand
    return bt


def scse_pallas(x_nchw, params):
    """x_nchw: (B, C, H, W) f32. params: dict of 1x1-conv weights/biases."""
    B, C, H, W = x_nchw.shape
    HW = H * W
    Cm = params["w1"].shape[0]

    # Native layout: a free reshape of NCHW; HW is the lane axis inside the kernel.
    x_flat = x_nchw.reshape(B, C, HW)

    # 1x1 convs as small matmuls in "column" orientation (no in-kernel relayouts).
    w1 = params["w1"].reshape(Cm, C)
    b1 = params["b1"].reshape(Cm, 1)
    w2 = params["w2"].reshape(C, Cm)
    b2 = params["b2"].reshape(C, 1)
    ws = params["ws"].reshape(1, C)
    bs = params["bs"].reshape(1)

    bt = _pick_batch_tile(B, C, HW)
    grid = (B // bt,)

    full = lambda shape: pl.BlockSpec(shape, lambda i: (0, 0))

    # TODO(synk): for production-size feature maps on v7x (64 MiB VMEM), tile HW and
    # precompute the cSE vector in a first pass instead of holding a full (C, HW) slab.
    out_flat = pl.pallas_call(
        scse_kernel,
        out_shape=jax.ShapeDtypeStruct((B, C, HW), jnp.float32),
        grid_spec=pltpu.PrefetchScalarGridSpec(
            num_scalar_prefetch=0,
            grid=grid,
            in_specs=[
                pl.BlockSpec((bt, C, HW), lambda i: (i, 0, 0)),
                full(w1.shape),
                full(b1.shape),
                full(w2.shape),
                full(b2.shape),
                full(ws.shape),
                pl.BlockSpec(memory_space=pltpu.MemorySpace.SMEM),
            ],
            out_specs=pl.BlockSpec((bt, C, HW), lambda i: (i, 0, 0)),
        ),
        compiler_params=pltpu.CompilerParams(
            dimension_semantics=("parallel",)),
    )(x_flat, w1, b1, w2, b2, ws, bs)

    return out_flat.reshape(B, C, H, W)


def attention_forward(x, params=None, name="scse"):
    """Pallas equivalent of `Attention.forward`: identity for name=None, SCSE for 'scse'."""
    if name is None:
        return x
    if name == "scse":
        return scse_pallas(x, params)
    raise ValueError("Attention {} is not implemented".format(name))


def scse_reference(x_nchw, params):
    """Plain-JAX reference matching the PyTorch forward."""
    B, C, H, W = x_nchw.shape
    Cm = params["w1"].shape[0]
    mean = jnp.mean(x_nchw, axis=(2, 3))                                    # (B, C)
    z1 = jnp.maximum(mean @ params["w1"].reshape(Cm, C).T
                     + params["b1"][None, :], 0.0)                          # (B, Cm)
    z2 = jax.nn.sigmoid(z1 @ params["w2"].reshape(C, Cm).T
                        + params["b2"][None, :])                            # (B, C)
    c_att = z2[:, :, None, None]
    s = jnp.einsum("bchw,c->bhw", x_nchw, params["ws"].reshape(C)) + params["bs"][0]
    s_att = jax.nn.sigmoid(s)[:, None, :, :]
    return x_nchw * c_att + x_nchw * s_att


def init_params(key, in_channels, reduction=16):
    Cm = in_channels // reduction
    k1, k2, k3, k4, k5, k6 = jax.random.split(key, 6)
    scale = 0.1
    return {
        # Conv2d(C, Cm, 1): weight (Cm, C, 1, 1), bias (Cm,)
        "w1": scale * jax.random.normal(k1, (Cm, in_channels), jnp.float32),
        "b1": scale * jax.random.normal(k2, (Cm,), jnp.float32),
        # Conv2d(Cm, C, 1): weight (C, Cm, 1, 1), bias (C,)
        "w2": scale * jax.random.normal(k3, (in_channels, Cm), jnp.float32),
        "b2": scale * jax.random.normal(k4, (in_channels,), jnp.float32),
        # Conv2d(C, 1, 1): weight (1, C, 1, 1), bias (1,)
        "ws": scale * jax.random.normal(k5, (1, in_channels), jnp.float32),
        "bs": scale * jax.random.normal(k6, (1,), jnp.float32),
    }


if __name__ == "__main__":
    key = jax.random.PRNGKey(0)
    kx, kp = jax.random.split(key)

    B, C, H, W = 2, 32, 16, 16      # in_channels=32, reduction=16 -> hidden=2
    x = jax.random.normal(kx, (B, C, H, W), jnp.float32)
    params = init_params(kp, C, reduction=16)

    out = attention_forward(x, params, name="scse")
    out = jax.block_until_ready(out)

    ref = scse_reference(x, params)
    assert out.shape == (B, C, H, W)
    assert jnp.allclose(out, ref, atol=1e-5, rtol=1e-5), "mismatch vs reference"

    print("KERNEL_OK")
</pallas_src>

<mosaic_0001>
module attributes {stable_mosaic.version = 11 : i64} {
  func.func @scse_kernel(%arg0: i32, %arg1: memref<2x32x256xf32, #tpu.memory_space<vmem>>, %arg2: memref<2x32xf32, #tpu.memory_space<vmem>>, %arg3: memref<2x1xf32, #tpu.memory_space<vmem>>, %arg4: memref<32x2xf32, #tpu.memory_space<vmem>>, %arg5: memref<32x1xf32, #tpu.memory_space<vmem>>, %arg6: memref<1x32xf32, #tpu.memory_space<vmem>>, %arg7: memref<1xf32, #tpu.memory_space<smem>>, %arg8: memref<2x32x256xf32, #tpu.memory_space<vmem>>) attributes {dimension_semantics = [#tpu.dimension_semantics<parallel>], iteration_bounds = array<i64: 1>, scalar_prefetch = 0 : i64, scratch_operands = 0 : i64, tpu.core_type = #tpu.core_type<tc>, window_params = [{transform_indices = @transform_0, window_bounds = array<i64: 2, 32, 256>}, {pipeline_mode = #tpu.pipeline_mode<synchronous>, transform_indices = @transform_1, window_bounds = array<i64: 2, 32>}, {pipeline_mode = #tpu.pipeline_mode<synchronous>, transform_indices = @transform_2, window_bounds = array<i64: 2, 1>}, {pipeline_mode = #tpu.pipeline_mode<synchronous>, transform_indices = @transform_3, window_bounds = array<i64: 32, 2>}, {pipeline_mode = #tpu.pipeline_mode<synchronous>, transform_indices = @transform_4, window_bounds = array<i64: 32, 1>}, {pipeline_mode = #tpu.pipeline_mode<synchronous>, transform_indices = @transform_5, window_bounds = array<i64: 1, 32>}, {transform_indices = @transform_6, window_bounds = array<i64: 1>}, {transform_indices = @transform_7, window_bounds = array<i64: 2, 32, 256>}]} {
    %c0 = arith.constant 0 : index
    %c0_0 = arith.constant 0 : index
    %0 = vector.load %arg2[%c0, %c0_0] : memref<2x32xf32, #tpu.memory_space<vmem>>, vector<2x32xf32>
    %c0_1 = arith.constant 0 : index
    %c0_2 = arith.constant 0 : index
    %1 = vector.load %arg3[%c0_1, %c0_2] : memref<2x1xf32, #tpu.memory_space<vmem>>, vector<2x1xf32>
    %c0_3 = arith.constant 0 : index
    %c0_4 = arith.constant 0 : index
    %2 = vector.load %arg4[%c0_3, %c0_4] : memref<32x2xf32, #tpu.memory_space<vmem>>, vector<32x2xf32>
    %c0_5 = arith.constant 0 : index
    %c0_6 = arith.constant 0 : index
    %3 = vector.load %arg5[%c0_5, %c0_6] : memref<32x1xf32, #tpu.memory_space<vmem>>, vector<32x1xf32>
    %c0_7 = arith.constant 0 : index
    %c0_8 = arith.constant 0 : index
    %4 = vector.load %arg6[%c0_7, %c0_8] : memref<1x32xf32, #tpu.memory_space<vmem>>, vector<1x32xf32>
    %c0_9 = arith.constant 0 : index
    %5 = memref.load %arg7[%c0_9] : memref<1xf32, #tpu.memory_space<smem>>
    %c0_10 = arith.constant 0 : index
    %c0_11 = arith.constant 0 : index
    %c0_12 = arith.constant 0 : index
    %6 = vector.load %arg1[%c0_10, %c0_11, %c0_12] : memref<2x32x256xf32, #tpu.memory_space<vmem>>, vector<1x32x256xf32>
    %7 = vector.shape_cast %6 : vector<1x32x256xf32> to vector<32x256xf32>
    %cst = arith.constant dense<0.000000e+00> : vector<32xf32>
    %8 = vector.multi_reduction <add>, %7, %cst [1] : vector<32x256xf32> to vector<32xf32>
    %9 = vector.shape_cast %8 : vector<32xf32> to vector<32x1xf32>
    %cst_13 = arith.constant 3.906250e-03 : f32
    %10 = vector.broadcast %cst_13 : f32 to vector<32x1xf32>
    %11 = arith.mulf %9, %10 : vector<32x1xf32>
    %cst_14 = arith.constant dense<0.000000e+00> : vector<2x1xf32>
    %12 = tpu.matmul %0, %11, %cst_14 {dimension_numbers = #tpu.dot_dimension_numbers<[1], [0], [0], [1], [0, 0, 1, 1], [], []>} : vector<2x32xf32>, vector<32x1xf32>, vector<2x1xf32> -> vector<2x1xf32>
    %13 = arith.addf %12, %1 : vector<2x1xf32>
    %cst_15 = arith.constant 0.000000e+00 : f32
    %14 = vector.broadcast %cst_15 : f32 to vector<2x1xf32>
    %15 = arith.maximumf %13, %14 : vector<2x1xf32>
    %cst_16 = arith.constant dense<0.000000e+00> : vector<32x1xf32>
    %16 = tpu.matmul %2, %15, %cst_16 {dimension_numbers = #tpu.dot_dimension_numbers<[1], [0], [0], [1], [0, 0, 1, 1], [], []>} : vector<32x2xf32>, vector<2x1xf32>, vector<32x1xf32> -> vector<32x1xf32>
    %17 = arith.addf %16, %3 : vector<32x1xf32>
    %18 = arith.negf %17 : vector<32x1xf32>
    %19 = math.exp %18 : vector<32x1xf32>
    %cst_17 = arith.constant 1.000000e+00 : f32
    %20 = vector.broadcast %cst_17 : f32 to vector<32x1xf32>
    %21 = arith.addf %20, %19 : vector<32x1xf32>
    %22 = arith.divf %20, %21 : vector<32x1xf32>
    %cst_18 = arith.constant dense<0.000000e+00> : vector<1x256xf32>
    %23 = tpu.matmul %4, %7, %cst_18 {dimension_numbers = #tpu.dot_dimension_numbers<[1], [0], [0], [1], [0, 0, 1, 1], [], []>} : vector<1x32xf32>, vector<32x256xf32>, vector<1x256xf32> -> vector<1x256xf32>
    %24 = vector.broadcast %5 : f32 to vector<1x256xf32>
    %25 = arith.addf %23, %24 : vector<1x256xf32>
    %26 = arith.negf %25 : vector<1x256xf32>
    %27 = math.exp %26 : vector<1x256xf32>
    %cst_19 = arith.constant 1.000000e+00 : f32
    %28 = vector.broadcast %cst_19 : f32 to vector<1x256xf32>
    %29 = arith.addf %28, %27 : vector<1x256xf32>
    %30 = arith.divf %28, %29 : vector<1x256xf32>
    %31 = vector.broadcast %22 : vector<32x1xf32> to vector<32x256xf32>
    %32 = vector.broadcast %30 : vector<1x256xf32> to vector<32x256xf32>
    %33 = arith.addf %31, %32 : vector<32x256xf32>
    %34 = arith.mulf %7, %33 : vector<32x256xf32>
    %c0_20 = arith.constant 0 : index
    %c0_21 = arith.constant 0 : index
    %c0_22 = arith.constant 0 : index
    %35 = vector.load %arg8[%c0_20, %c0_21, %c0_22] : memref<2x32x256xf32, #tpu.memory_space<vmem>>, vector<1x32x256xf32>
    %36 = vector.shape_cast %35 : vector<1x32x256xf32> to vector<32x256xf32>
    %37 = vector.shape_cast %34 : vector<32x256xf32> to vector<1x32x256xf32>
    tpu.vector_store %arg8[%c0_20, %c0_21, %c0_22], %37 {strides = array<i32>} : memref<2x32x256xf32, #tpu.memory_space<vmem>>, vector<1x32x256xf32>,
    %c1 = arith.constant 1 : index
    %c0_23 = arith.constant 0 : index
    %c0_24 = arith.constant 0 : index
    %38 = vector.load %arg1[%c1, %c0_23, %c0_24] : memref<2x32x256xf32, #tpu.memory_space<vmem>>, vector<1x32x256xf32>
    %39 = vector.shape_cast %38 : vector<1x32x256xf32> to vector<32x256xf32>
    %cst_25 = arith.constant dense<0.000000e+00> : vector<32xf32>
    %40 = vector.multi_reduction <add>, %39, %cst_25 [1] : vector<32x256xf32> to vector<32xf32>
    %41 = vector.shape_cast %40 : vector<32xf32> to vector<32x1xf32>
    %cst_26 = arith.constant 3.906250e-03 : f32
    %42 = vector.broadcast %cst_26 : f32 to vector<32x1xf32>
    %43 = arith.mulf %41, %42 : vector<32x1xf32>
    %cst_27 = arith.constant dense<0.000000e+00> : vector<2x1xf32>
    %44 = tpu.matmul %0, %43, %cst_27 {dimension_numbers = #tpu.dot_dimension_numbers<[1], [0], [0], [1], [0, 0, 1, 1], [], []>} : vector<2x32xf32>, vector<32x1xf32>, vector<2x1xf32> -> vector<2x1xf32>
    %45 = arith.addf %44, %1 : vector<2x1xf32>
    %cst_28 = arith.constant 0.000000e+00 : f32
    %46 = vector.broadcast %cst_28 : f32 to vector<2x1xf32>
    %47 = arith.maximumf %45, %46 : vector<2x1xf32>
    %cst_29 = arith.constant dense<0.000000e+00> : vector<32x1xf32>
    %48 = tpu.matmul %2, %47, %cst_29 {dimension_numbers = #tpu.dot_dimension_numbers<[1], [0], [0], [1], [0, 0, 1, 1], [], []>} : vector<32x2xf32>, vector<2x1xf32>, vector<32x1xf32> -> vector<32x1xf32>
    %49 = arith.addf %48, %3 : vector<32x1xf32>
    %50 = arith.negf %49 : vector<32x1xf32>
    %51 = math.exp %50 : vector<32x1xf32>
    %cst_30 = arith.constant 1.000000e+00 : f32
    %52 = vector.broadcast %cst_30 : f32 to vector<32x1xf32>
    %53 = arith.addf %52, %51 : vector<32x1xf32>
    %54 = arith.divf %52, %53 : vector<32x1xf32>
    %cst_31 = arith.constant dense<0.000000e+00> : vector<1x256xf32>
    %55 = tpu.matmul %4, %39, %cst_31 {dimension_numbers = #tpu.dot_dimension_numbers<[1], [0], [0], [1], [0, 0, 1, 1], [], []>} : vector<1x32xf32>, vector<32x256xf32>, vector<1x256xf32> -> vector<1x256xf32>
    %56 = vector.broadcast %5 : f32 to vector<1x256xf32>
    %57 = arith.addf %55, %56 : vector<1x256xf32>
    %58 = arith.negf %57 : vector<1x256xf32>
    %59 = math.exp %58 : vector<1x256xf32>
    %cst_32 = arith.constant 1.000000e+00 : f32
    %60 = vector.broadcast %cst_32 : f32 to vector<1x256xf32>
    %61 = arith.addf %60, %59 : vector<1x256xf32>
    %62 = arith.divf %60, %61 : vector<1x256xf32>
    %63 = vector.broadcast %54 : vector<32x1xf32> to vector<32x256xf32>
    %64 = vector.broadcast %62 : vector<1x256xf32> to vector<32x256xf32>
    %65 = arith.addf %63, %64 : vector<32x256xf32>
    %66 = arith.mulf %39, %65 : vector<32x256xf32>
    %c1_33 = arith.constant 1 : index
    %c0_34 = arith.constant 0 : index
    %c0_35 = arith.constant 0 : index
    %67 = vector.load %arg8[%c1_33, %c0_34, %c0_35] : memref<2x32x256xf32, #tpu.memory_space<vmem>>, vector<1x32x256xf32>
    %68 = vector.shape_cast %67 : vector<1x32x256xf32> to vector<32x256xf32>
    %69 = vector.shape_cast %66 : vector<32x256xf32> to vector<1x32x256xf32>
    tpu.vector_store %arg8[%c1_33, %c0_34, %c0_35], %69 {strides = array<i32>} : memref<2x32x256xf32, #tpu.memory_space<vmem>>, vector<1x32x256xf32>,
    return
  }
  func.func @transform_0(%arg0: i32) -> (i32, i32, i32) {
    %c0_i32 = arith.constant 0 : i32
    %c0_i32_0 = arith.constant 0 : i32
    %c0_i32_1 = arith.constant 0 : i32
    return %arg0, %c0_i32, %c0_i32_0 : i32, i32, i32
  }
  func.func @transform_1(%arg0: i32) -> (i32, i32) {
    %c0_i32 = arith.constant 0 : i32
    %c0_i32_0 = arith.constant 0 : i32
    %c0_i32_1 = arith.constant 0 : i32
    return %c0_i32, %c0_i32_0 : i32, i32
  }
  func.func @transform_2(%arg0: i32) -> (i32, i32) {
    %c0_i32 = arith.constant 0 : i32
    %c0_i32_0 = arith.constant 0 : i32
    %c0_i32_1 = arith.constant 0 : i32
    return %c0_i32, %c0_i32_0 : i32, i32
  }
  func.func @transform_3(%arg0: i32) -> (i32, i32) {
    %c0_i32 = arith.constant 0 : i32
    %c0_i32_0 = arith.constant 0 : i32
    %c0_i32_1 = arith.constant 0 : i32
    return %c0_i32, %c0_i32_0 : i32, i32
  }
  func.func @transform_4(%arg0: i32) -> (i32, i32) {
    %c0_i32 = arith.constant 0 : i32
    %c0_i32_0 = arith.constant 0 : i32
    %c0_i32_1 = arith.constant 0 : i32
    return %c0_i32, %c0_i32_0 : i32, i32
  }
  func.func @transform_5(%arg0: i32) -> (i32, i32) {
    %c0_i32 = arith.constant 0 : i32
    %c0_i32_0 = arith.constant 0 : i32
    %c0_i32_1 = arith.constant 0 : i32
    return %c0_i32, %c0_i32_0 : i32, i32
  }
  func.func @transform_6(%arg0: i32) -> i32 {
    %c0_i32 = arith.constant 0 : i32
    %c0_i32_0 = arith.constant 0 : i32
    return %c0_i32 : i32
  }
  func.func @transform_7(%arg0: i32) -> (i32, i32, i32) {
    %c0_i32 = arith.constant 0 : i32
    %c0_i32_0 = arith.constant 0 : i32
    %c0_i32_1 = arith.constant 0 : i32
    return %arg0, %c0_i32, %c0_i32_0 : i32, i32, i32
  }
}

</mosaic_0001>

<bundles_post_ra>
// kernel: tpu_custom_call.1
= control target key start
LH: loop header
LB: loop body
LE: loop exit
PB: predicated region body
PF: predicated region fallthrough
CT: control target
= control target key end

     0   :  { %13 = vsyncpa [#allocation4], 0  ;;  %s1249_s0 = inlined_call_operand.hbm [shape: f32[2,32,256], index: 0, kind: input, shape index: {}]   ;;  %s1250_s1 = inlined_call_operand.vmem [shape: f32[2,32], index: 1, kind: input, shape index: {}]   ;;  %s1251_s2 = inlined_call_operand.vmem [shape: f32[2,1], index: 2, kind: input, shape index: {}]   ;;  %s1252_s3 = inlined_call_operand.vmem [shape: f32[32,2], index: 3, kind: input, shape index: {}]   ;;  %s1253_s4 = inlined_call_operand.vmem [shape: f32[32,1], index: 4, kind: input, shape index: {}]   ;;  %s1254_s5 = inlined_call_operand.vmem [shape: f32[1,32], index: 5, kind: input, shape index: {}]   ;;  %s1255_s6 = inlined_call_operand.<no memory space> [shape: f32[1], index: 6, kind: input, shape index: {}]   ;;  %s1256_s7 = inlined_call_operand.hbm [shape: f32[2,32,256], index: 7, kind: output, shape index: {}]  }
   0x1   :  { %14 = vsyncpa [#allocation5], 0  ;;  %s997_s24 = smov [#allocation3]   ;;  %s949_s28 = scalar_lea.hbm %s1249_s0, 2048 }
   0x2   :  { %s20_s25 = sshll.u32 %s997_s24, 4  ;;  %p950_p0 = scmp.ne.s32.totalorder %s1249_s0, %s949_s28  ;;  %s21_s25 = int_to_ptr.vmem [resolvable:$true] %s20_s25 }
   0x3   :  { %p953_p1 = scmp.lt.u32.totalorder %s949_s28, %s1249_s0 }
   0x5   :  { %p955_p2 = pnand %p953_p1, %p950_p0 }
   0x7   :  { %958 = shalt.err (!%p955_p2)
}
   0x8   :  { %s959_s10 = scalar_lea.vmem %s21_s25, 2048  ;;  %p964_p4 = scmp.lt.s32.totalorder %s21_s25, %s21_s25 }
   0x9   :  { %p960_p3 = scmp.ne.s32.totalorder %s21_s25, %s959_s10  ;;  %p965_p5 = scmp.lt.s32.totalorder %s959_s10, %s959_s10 }
   0xb   :  { %p966_p6 = por %p965_p5, %p964_p4 }
   0xd   :  { %p967_p7 = pnand %p966_p6, %p960_p3 }
   0xf   :  { %970 = shalt.err (!%p967_p7)
}
  0x10   :  { %s998_s11 = smov 256   ;;  %s999_s12 = smov 16  }
  0x11   :  { %26 = dma.hbm_to_vmem [thread:$0]  %s1249_s0, 2048, %s21_s25, [#allocation4], %s998_s11, %s998_s11, %s999_s12  }
  0x12   :  { %993 = dma.done.wait [#allocation4], 2048  }
  0x13   :  { %994 = vsyncadd [#allocation4], 4294965248  ;;  %v1060_v0 = vld [vmem:[#allocation3 + $0x20] sm:$0xff]  ;;  %v1062_v1 = vld [vmem:[#allocation3 + $0x28] sm:$0xff]  ;;  %v1000_v12 = vmov 0.0|0.0   ;;  %vm1001_vm0 = vmmov 0  }
  0x14   :  { %v1064_v2 = vld [vmem:[#allocation3] sm:$0xff]  ;;  %v68_v3 = vadd.f32 %v1062_v1, %v1060_v0  ;;  %v1068_v4 = vld [vmem:[#allocation3 + $0x8] sm:$0xff]  ;;  %v1070_v5 = vld [vmem:[#allocation3 + $0x30] sm:$0xff]  ;;  %863 = vmatprep.subr.bf16.mxu0 %v1000_v12  ;;  %v1002_v13 = vmov 0.0   ;;  %vm78_vm1 = vcmask 261120   ;;  %vm153_vm2 = vcmask 15360  }
  0x15   :  { %v1072_v6 = vld [vmem:[#allocation3 + $0x38] sm:$0xff]  ;;  %v62_v7 = vadd.f32 %v1068_v4, %v1064_v2  ;;  %v1076_v8 = vld [vmem:[#allocation3 + $0x10] sm:$0xff]  ;;  %833 = vmatprep.mubr.msk.f32.mxu0 %vm1001_vm0, %v1002_v13  ;;  %347 = vmatprep.mubr.f32.mxu1 %v1002_v13  ;;  %v1092_v16 = vld [vmem:[#allocation3 + $0x40] sm:$0xff]  ;;  %v875_v41 = vpack.c.bf16 %v1070_v5, %v1060_v0  ;;  %vm166_vm3 = vcmask 1041408   ;;  %v1003_v61 = vmov 0  }
  0x16   :  { %v1078_v9 = vld [vmem:[#allocation3 + $0x18] sm:$0xff]  ;;  %69 = vadd.xlane.f32.xlu1 %v68_v3  ;;  %v71_v10 = vadd.f32 %v1072_v6, %v1070_v5  ;;  %v1088_v14 = vld [vmem:[#allocation3 + $0x50] sm:$0xff]  ;;  %v1096_v18 = vld [vmem:[#allocation3 + $0x48] sm:$0xff]  ;;  %v871_v39 = vpack.c.bf16 %v1076_v8, %v1064_v2  ;;  %v873_v40 = vpack.c.bf16 %v1072_v6, %v1062_v1  ;;  %899 = vset.pattern.permute.xlu0 %v1003_v61 }
  0x17   :  { %63 = vadd.xlane.f32.xlu0 %v62_v7  ;;  %v65_v11 = vadd.f32 %v1078_v9, %v1076_v8  ;;  %v1090_v15 = vld [vmem:[#allocation3 + $0x58] sm:$0xff]  ;;  %v1098_v19 = vld [vmem:[#allocation3 + $0x70] sm:$0xff]  ;;  %v427_v21 = vadd.f32 %v1096_v18, %v1092_v16  ;;  %v1104_v22 = vld [vmem:[#allocation3 + $0x60] sm:$0xff]  ;;  %v869_v38 = vpack.c.bf16 %v1078_v9, %v1068_v4  ;;  %900 = vset.pattern.permute.xlu1 %v1003_v61  ;;  %v386_v61 = vlaneseq }
  0x18   :  { %v430_v17 = vadd.f32 %v1090_v15, %v1088_v14  ;;  %v1100_v20 = vld [vmem:[#allocation3 + $0x78] sm:$0xff]  ;;  %v1106_v23 = vld [vmem:[#allocation3 + $0x68] sm:$0xff]  ;;  %v42_v36 = vld [vmem:[%s1250_s1] sm:$0x3] }
  0x19   :  { %v436_v24 = vadd.f32 %v1100_v20, %v1098_v19  ;;  %v433_v25 = vadd.f32 %v1106_v23, %v1104_v22  ;;  %v44_v37 = vld [vmem:[%s1252_s3] sm:$0xff]  ;;  %870 = vmatprep.subr.bf16.mxu1 %v869_v38  ;;  %v45_v57 = vld [vmem:[%s1252_s3 + $0x8] sm:$0xff]  ;;  %v46_v58 = vld [vmem:[%s1252_s3 + $0x10] sm:$0xff]  ;;  %v885_v38 = vpack.c.bf16 %v1088_v14, %v1092_v16 }
  0x1a   :  { %72 = vadd.xlane.f32.xlu1 %v71_v10  ;;  %872 = vmatpush1.bf16.msra.mxu1 %v871_v39  ;;  %v1132_v42 = vld [vmem:[%s1254_s5] sm:$0x1]  ;;  %v47_v60 = vld [vmem:[%s1252_s3 + $0x18] sm:$0xff]  ;;  %v1162_v3 = vld [vmem:[%s1253_s4 + $0x8] sm:$0xff]  ;;  %v887_v39 = vpack.c.bf16 %v1100_v20, %v1106_v23 }
  0x1b   :  { %66 = vadd.xlane.f32.xlu0 %v65_v11  ;;  %874 = vmatprep.subr.bf16.mxu1 %v873_v40  ;;  %v43_v45 = vld [vmem:[%s1251_s2] sm:$0x3] }
  0x1c   :  { %v1167_v7 = vld [vmem:[%s1253_s4] sm:$0xff] }
  0x1e   :  { %431 = vadd.xlane.f32.xlu1 %v430_v17  ;;  %876 = vmatpush1.bf16.msra.mxu1 %v875_v41 }
  0x1f   :  { %428 = vadd.xlane.f32.xlu0 %v427_v21  ;;  %v1174_v21 = vld [vmem:[%s1253_s4 + $0x18] sm:$0xff] }
  0x21   :  { %789 = vmatmul.mubr.msk.f32.vlgmr.msra.gmra.mrb[0].mxu1 %vm78_vm1, %v1132_v42 }
  0x22   :  { %437 = vadd.xlane.f32.xlu1 %v436_v24  ;;  %857 = vmatprep.mubr.msk.f32.mxu1 %vm153_vm2, %v44_v37 }
  0x23   :  { %434 = vadd.xlane.f32.xlu0 %v433_v25  ;;  %v1179_v25 = vld [vmem:[%s1253_s4 + $0x10] sm:$0xff] }
  0xa3   :  { %v70_v26 = vpop.xlane.xlu1 %69 }
  0xa4   :  { %v64_v27 = vpop.xlane.xlu0 %63  ;;  %v76_v32 = vmul.f32 0.00390625, %v70_v26 }
  0xa5   :  { %v74_v30 = vmul.f32 0.00390625, %v64_v27 }
  0xa7   :  { %v73_v28 = vpop.xlane.xlu1 %72 }
  0xa8   :  { %v67_v29 = vpop.xlane.xlu0 %66  ;;  %v77_v33 = vmul.f32 0.00390625, %v73_v28 }
  0xa9   :  { %v75_v31 = vmul.f32 0.00390625, %v67_v29 }
  0xaa   :  { %v867_v35 = vpack.c.bf16 %v77_v33, %v76_v32 }
  0xab   :  { %v864_v34 = vpack.c.bf16 %v75_v31, %v74_v30  ;;  %v432_v43 = vpop.xlane.xlu1 %431 }
  0xac   :  { %v429_v44 = vpop.xlane.xlu0 %428  ;;  %v440_v47 = vmul.f32 0.00390625, %v432_v43  ;;  %v889_v43 = vpack.c.bf16 %v1098_v19, %v1104_v22 }
  0xad   :  { %865 = vmatpush3.bf16.msra.mxu0 %v864_v34  ;;  %v439_v48 = vmul.f32 0.00390625, %v429_v44 }
  0xae   :  { %866 = vmatprep.subr.bf16.mxu0 %v1000_v12 }
  0xaf   :  { %v438_v49 = vpop.xlane.xlu1 %437  ;;  %v878_v54 = vpack.c.bf16 %v440_v47, %v439_v48 }
  0xb0   :  { %v435_v52 = vpop.xlane.xlu0 %434  ;;  %v442_v55 = vmul.f32 0.00390625, %v438_v49 }
  0xb1   :  { %868 = vmatpush3.bf16.msra.mxu0 %v867_v35  ;;  %v441_v56 = vmul.f32 0.00390625, %v435_v52 }
  0xb3   :  { %v881_v59 = vpack.c.bf16 %v442_v55, %v441_v56 }
  0xb4   :  { %834 = vmatmul.mubr.msk.f32.vlgmr.msra.gmra.mrb[0].mxu0 %vm78_vm1, %v42_v36 }
  0xb5   :  { %838 = vmatprep.mubr.msk.f32.mxu0 %vm153_vm2, %v44_v37  ;;  %v883_v37 = vpack.c.bf16 %v1090_v15, %v1096_v18 }
  0xf4   :  { %v349_v62 = vpop.f32.mrb[0].mxu1 }
  0xf5   :  { %v351_v63 = vpop.f32.mrb[1].mxu1 }
 0x187   :  { %v148_v46 = vpop.f32.mrb[0].mxu0 }
 0x188   :  { %v149_v50 = vadd.f32 %v148_v46, %v43_v45  ;;  %v835_v51 = vpop.f32.mrb[1].mxu0 }
 0x18a   :  { %v152_v53 = vmax.f32 %v149_v50, 0.0 }
 0x18c   :  { %836 = vmatprep.subr.msk.mxu0 %vm166_vm3, %v152_v53 }
 0x18d   :  { %837 = vmatpush3.msk.msra.mxu0 %vm166_vm3, %v152_v53 }
 0x18e   :  { %839 = vmatmul.mubr.msk.f32.vlgmr.msra.gmra.mrb[2].mxu0 %vm153_vm2, %v45_v57  ;;  %877 = vmatprep.subr.bf16.mxu0 %v1000_v12 }
 0x18f   :  { %879 = vmatpush3.bf16.msra.mxu0 %v878_v54  ;;  %841 = vmatprep.mubr.msk.f32.mxu0 %vm153_vm2, %v46_v58  ;;  %v1202_v54 = vstv %s1255_s6  ;;  %s1004_s6 = smov [#allocation6]  }
 0x190   :  { %880 = vmatprep.subr.bf16.mxu0 %v1000_v12  ;;  %v352_v55 = vadd.f32 %v351_v63, %v1202_v54  ;;  %s767_s10 = sshll.u32 %s1004_s6, 4  ;;  %s768_s10 = int_to_ptr.vmem [resolvable:$true] %s767_s10 }
 0x191   :  { %s971_s13 = scalar_lea.vmem %s768_s10, 2048  ;;  %p976_p9 = scmp.lt.s32.totalorder %s768_s10, %s768_s10 }
 0x192   :  { %842 = vmatmul.mubr.msk.f32.gmra.mrb[4].mxu0 %vm153_vm2, %v47_v60  ;;  %p972_p8 = scmp.ne.s32.totalorder %s768_s10, %s971_s13  ;;  %p977_p10 = scmp.lt.s32.totalorder %s971_s13, %s971_s13 }
 0x193   :  { %882 = vmatpush3.bf16.msra.mxu0 %v881_v59  ;;  %852 = vmatprep.mubr.msk.f32.mxu0 %vm1001_vm0, %v1002_v13 }
 0x194   :  { %p978_p11 = por %p977_p10, %p976_p9 }
 0x196   :  { %853 = vmatmul.mubr.msk.f32.vlgmr.msra.gmra.mrb[6].mxu0 %vm78_vm1, %v42_v36  ;;  %p979_p12 = pnand %p978_p11, %p972_p8 }
 0x261   :  { %v840_v10 = vpop.f32.mrb[2].mxu0 }
 0x262   :  { %v242_v11 = vadd.f32 %v840_v10, %v1162_v3  ;;  %v236_v12 = vpop.f32.mrb[3].mxu0  ;;  %v387_v10 = vshrl.u32 %v386_v61, 7 }
 0x263   :  { %v237_v17 = vadd.f32 %v236_v12, %v1167_v7 }
 0x264   :  { %v786_v24 = vmul.f32 -1.442695, %v242_v11  ;;  %v1206_v12 = vsub.s32 0, %v387_v10 }
 0x265   :  { %v785_v26 = vmul.f32 -1.442695, %v237_v17  ;;  %v843_v27 = vpop.f32.mrb[4].mxu0 }
 0x266   :  { %901 = vpow2.f32 %v786_v24  ;;  %v252_v28 = vadd.f32 %v843_v27, %v1174_v21  ;;  %v246_v29 = vpop.f32.mrb[5].mxu0 }
 0x267   :  { %903 = vpow2.f32 %v785_v26  ;;  %v247_v30 = vadd.f32 %v246_v29, %v1179_v25 }
 0x268   :  { %v788_v31 = vmul.f32 -1.442695, %v252_v28 }
 0x269   :  { %v787_v32 = vmul.f32 -1.442695, %v247_v30  ;;  %v509_v33 = vpop.f32.mrb[6].mxu0 }
 0x26a   :  { %905 = vpow2.f32 %v788_v31  ;;  %v510_v34 = vadd.f32 %v509_v33, %v43_v45  ;;  %v854_v35 = vpop.f32.mrb[7].mxu0 }
 0x26b   :  { %907 = vpow2.f32 %v787_v32 }
 0x26c   :  { %v513_v36 = vmax.f32 %v510_v34, 0.0 }
 0x26e   :  { %855 = vmatprep.subr.msk.mxu1 %vm166_vm3, %v513_v36 }
 0x26f   :  { %856 = vmatpush3.msk.msra.mxu1 %vm166_vm3, %v513_v36 }
 0x270   :  { %v902_v40 = vpop.eup %901  ;;  %858 = vmatmul.mubr.msk.f32.vlgmr.msra.gmra.mrb[2].mxu1 %vm153_vm2, %v45_v57  ;;  %884 = vmatprep.subr.bf16.mxu1 %v883_v37 }
 0x271   :  { %v904_v41 = vpop.eup %903  ;;  %v268_v44 = vadd.f32 1.0, %v902_v40  ;;  %860 = vmatprep.mubr.msk.f32.mxu1 %vm153_vm2, %v46_v58  ;;  %886 = vmatpush1.bf16.msra.mxu1 %v885_v38 }
 0x272   :  { %v267_v45 = vadd.f32 1.0, %v904_v41  ;;  %888 = vmatprep.subr.bf16.mxu1 %v887_v39 }
 0x273   :  { %909 = vrcp.f32 %v268_v44 }
 0x274   :  { %v906_v46 = vpop.eup %905  ;;  %911 = vrcp.f32 %v267_v45  ;;  %861 = vmatmul.mubr.msk.f32.gmra.mrb[4].mxu1 %vm153_vm2, %v47_v60 }
 0x275   :  { %v908_v47 = vpop.eup %907  ;;  %v270_v48 = vadd.f32 1.0, %v906_v46  ;;  %890 = vmatpush1.bf16.msra.mxu1 %v889_v43  ;;  %690 = vmatprep.mubr.f32.mxu1 %v1002_v13  ;;  %v350_v13 = vadd.f32 %v349_v62, %v1202_v54 }
 0x276   :  { %v269_v49 = vadd.f32 1.0, %v908_v47 }
 0x277   :  { %913 = vrcp.f32 %v270_v48  ;;  %v790_v56 = vmul.f32 -1.442695, %v350_v13 }
 0x278   :  { %802 = vmatmul.mubr.msk.f32.vlgmr.msra.gmra.mrb[6].mxu1 %vm78_vm1, %v1132_v42  ;;  %915 = vrcp.f32 %v269_v49  ;;  %v791_v42 = vmul.f32 -1.442695, %v352_v55 }
 0x279   :  { %917 = vpow2.f32 %v790_v56 }
 0x27a   :  { %919 = vpow2.f32 %v791_v42 }
 0x27d   :  { %v910_v50 = vpop.eup %909 }
 0x27e   :  { %v912_v51 = vpop.eup %911  ;;  %373 = vperm.xlu1 %900, %v910_v50  }
 0x27f   :  { %368 = vperm.xlu0 %899, %v912_v51  }
 0x281   :  { %v914_v52 = vpop.eup %913 }
 0x282   :  { %383 = vperm.xlu1 %900, %v914_v52   ;;  %v916_v53 = vpop.eup %915 }
 0x283   :  { %v918_v57 = vpop.eup %917 }
 0x284   :  { %v920_v58 = vpop.eup %919  ;;  %v360_v59 = vadd.f32 1.0, %v918_v57 }
 0x285   :  { %v361_v60 = vadd.f32 1.0, %v920_v58 }
 0x286   :  { %378 = vperm.xlu1 %900, %v916_v53   ;;  %921 = vrcp.f32 %v360_v59 }
 0x287   :  { %923 = vrcp.f32 %v361_v60 }
 0x290   :  { %v922_v11 = vpop.eup %921 }
 0x291   :  { %v924_v17 = vpop.eup %923  ;;  %v389_v62 = vrot.slane %v922_v11, %v1206_v12 }
 0x292   :  { %v393_v63 = vrot.slane %v924_v17, %v1206_v12 }
 0x2fd   :  { %v374_v24 = vpop.permute.xlu1 %373 }
 0x2fe   :  { %v396_v26 = vadd.f32 %v389_v62, %v374_v24  ;;  %v397_v27 = vadd.f32 %v393_v63, %v374_v24  ;;  %v369_v28 = vpop.permute.xlu0 %368 }
 0x2ff   :  { %v394_v29 = vadd.f32 %v389_v62, %v369_v28  ;;  %v395_v30 = vadd.f32 %v393_v63, %v369_v28 }
 0x300   :  { %v404_v31 = vmul.f32 %v396_v26, %v1076_v8  ;;  %v405_v32 = vmul.f32 %v397_v27, %v1078_v9 }
 0x301   :  { %v402_v33 = vmul.f32 %v394_v29, %v1064_v2  ;;  %v403_v34 = vmul.f32 %v395_v30, %v1068_v4  ;;  %v384_v35 = vpop.permute.xlu1 %383 }
 0x302   :  { %412 = vst [vmem:[#allocation6 + $0x10] sm:$0xff] %v404_v31  ;;  %413 = vst [vmem:[#allocation6 + $0x18] sm:$0xff] %v405_v32  ;;  %v400_v36 = vadd.f32 %v389_v62, %v384_v35  ;;  %v401_v37 = vadd.f32 %v393_v63, %v384_v35 }
 0x303   :  { %410 = vst [vmem:[#allocation6] sm:$0xff] %v402_v33  ;;  %411 = vst [vmem:[#allocation6 + $0x8] sm:$0xff] %v403_v34 }
 0x304   :  { %v408_v38 = vmul.f32 %v400_v36, %v1070_v5  ;;  %v409_v39 = vmul.f32 %v401_v37, %v1072_v6 }
 0x305   :  { %v379_v40 = vpop.permute.xlu1 %378 }
 0x306   :  { %416 = vst [vmem:[#allocation6 + $0x30] sm:$0xff] %v408_v38  ;;  %417 = vst [vmem:[#allocation6 + $0x38] sm:$0xff] %v409_v39  ;;  %v398_v8 = vadd.f32 %v389_v62, %v379_v40  ;;  %v399_v9 = vadd.f32 %v393_v63, %v379_v40 }
 0x308   :  { %v406_v2 = vmul.f32 %v398_v8, %v1060_v0  ;;  %v407_v4 = vmul.f32 %v399_v9, %v1062_v1 }
 0x30a   :  { %414 = vst [vmem:[#allocation6 + $0x20] sm:$0xff] %v406_v2  ;;  %415 = vst [vmem:[#allocation6 + $0x28] sm:$0xff] %v407_v4 }
 0x343   :  { %v859_v41 = vpop.f32.mrb[2].mxu1 }
 0x344   :  { %v589_v43 = vadd.f32 %v859_v41, %v1162_v3  ;;  %v583_v44 = vpop.f32.mrb[3].mxu1 }
 0x345   :  { %v584_v45 = vadd.f32 %v583_v44, %v1167_v7 }
 0x346   :  { %v799_v5 = vmul.f32 -1.442695, %v589_v43 }
 0x347   :  { %v798_v46 = vmul.f32 -1.442695, %v584_v45  ;;  %v862_v6 = vpop.f32.mrb[4].mxu1 }
 0x348   :  { %925 = vpow2.f32 %v799_v5  ;;  %v599_v47 = vadd.f32 %v862_v6, %v1174_v21  ;;  %v593_v48 = vpop.f32.mrb[5].mxu1 }
 0x349   :  { %927 = vpow2.f32 %v798_v46  ;;  %v594_v0 = vadd.f32 %v593_v48, %v1179_v25 }
 0x34a   :  { %v801_v50 = vmul.f32 -1.442695, %v599_v47 }
 0x34b   :  { %v800_v49 = vmul.f32 -1.442695, %v594_v0  ;;  %v692_v1 = vpop.f32.mrb[6].mxu1 }
 0x34c   :  { %v694_v51 = vpop.f32.mrb[7].mxu1  ;;  %v693_v59 = vadd.f32 %v692_v1, %v1202_v54 }
 0x34d   :  { %929 = vpow2.f32 %v800_v49  ;;  %v695_v60 = vadd.f32 %v694_v51, %v1202_v54 }
 0x34e   :  { %931 = vpow2.f32 %v801_v50  ;;  %v803_v61 = vmul.f32 -1.442695, %v693_v59 }
 0x34f   :  { %v804_v10 = vmul.f32 -1.442695, %v695_v60 }
 0x352   :  { %v926_v3 = vpop.eup %925 }
 0x353   :  { %v928_v52 = vpop.eup %927  ;;  %v615_v53 = vadd.f32 1.0, %v926_v3 }
 0x354   :  { %v614_v7 = vadd.f32 1.0, %v928_v52 }
 0x355   :  { %933 = vrcp.f32 %v615_v53 }
 0x356   :  { %935 = vrcp.f32 %v614_v7 }
 0x357   :  { %v930_v13 = vpop.eup %929 }
 0x358   :  { %v616_v55 = vadd.f32 1.0, %v930_v13  ;;  %v932_v56 = vpop.eup %931 }
 0x359   :  { %v617_v21 = vadd.f32 1.0, %v932_v56 }
 0x35a   :  { %937 = vrcp.f32 %v616_v55 }
 0x35b   :  { %939 = vrcp.f32 %v617_v21 }
 0x35c   :  { %941 = vpow2.f32 %v803_v61 }
 0x35d   :  { %943 = vpow2.f32 %v804_v10 }
 0x35f   :  { %v934_v42 = vpop.eup %933 }
 0x360   :  { %716 = vperm.xlu1 %900, %v934_v42   ;;  %v936_v25 = vpop.eup %935 }
 0x364   :  { %711 = vperm.xlu1 %900, %v936_v25   ;;  %v938_v57 = vpop.eup %937 }
 0x365   :  { %v940_v58 = vpop.eup %939 }
 0x366   :  { %v942_v11 = vpop.eup %941 }
 0x367   :  { %v944_v17 = vpop.eup %943  ;;  %v703_v62 = vadd.f32 1.0, %v942_v11 }
 0x368   :  { %721 = vperm.xlu1 %900, %v938_v57   ;;  %v704_v63 = vadd.f32 1.0, %v944_v17 }
 0x369   :  { %945 = vrcp.f32 %v703_v62 }
 0x36a   :  { %947 = vrcp.f32 %v704_v63 }
 0x36c   :  { %726 = vperm.xlu1 %900, %v940_v58  }
 0x373   :  { %v946_v24 = vpop.eup %945 }
 0x374   :  { %v948_v26 = vpop.eup %947  ;;  %v732_v27 = vrot.slane %v946_v24, %v1206_v12 }
 0x375   :  { %v736_v28 = vrot.slane %v948_v26, %v1206_v12 }
 0x3df   :  { %v717_v29 = vpop.permute.xlu1 %716 }
 0x3e0   :  { %v739_v30 = vadd.f32 %v732_v27, %v717_v29  ;;  %v740_v31 = vadd.f32 %v736_v28, %v717_v29 }
 0x3e2   :  { %v747_v54 = vmul.f32 %v739_v30, %v1088_v14  ;;  %v748_v32 = vmul.f32 %v740_v31, %v1090_v15 }
 0x3e3   :  { %v712_v33 = vpop.permute.xlu1 %711 }
 0x3e4   :  { %756 = vst [vmem:[#allocation6 + $0x50] sm:$0xff] %v747_v54  ;;  %757 = vst [vmem:[#allocation6 + $0x58] sm:$0xff] %v748_v32  ;;  %v737_v34 = vadd.f32 %v732_v27, %v712_v33  ;;  %v738_v35 = vadd.f32 %v736_v28, %v712_v33 }
 0x3e6   :  { %v745_v36 = vmul.f32 %v737_v34, %v1092_v16  ;;  %v746_v37 = vmul.f32 %v738_v35, %v1096_v18 }
 0x3e7   :  { %v722_v38 = vpop.permute.xlu1 %721 }
 0x3e8   :  { %754 = vst [vmem:[#allocation6 + $0x40] sm:$0xff] %v745_v36  ;;  %755 = vst [vmem:[#allocation6 + $0x48] sm:$0xff] %v746_v37  ;;  %v741_v12 = vadd.f32 %v732_v27, %v722_v38  ;;  %v742_v39 = vadd.f32 %v736_v28, %v722_v38 }
 0x3ea   :  { %v749_v40 = vmul.f32 %v741_v12, %v1104_v22  ;;  %v750_v14 = vmul.f32 %v742_v39, %v1106_v23 }
 0x3eb   :  { %v727_v8 = vpop.permute.xlu1 %726 }
 0x3ec   :  { %758 = vst [vmem:[#allocation6 + $0x60] sm:$0xff] %v749_v40  ;;  %759 = vst [vmem:[#allocation6 + $0x68] sm:$0xff] %v750_v14  ;;  %v743_v15 = vadd.f32 %v732_v27, %v727_v8  ;;  %v744_v9 = vadd.f32 %v736_v28, %v727_v8 }
 0x3ee   :  { %v751_v16 = vmul.f32 %v743_v15, %v1098_v19  ;;  %v752_v18 = vmul.f32 %v744_v9, %v1100_v20 }
 0x3f0   :  { %760 = vst [vmem:[#allocation6 + $0x70] sm:$0xff] %v751_v16  ;;  %761 = vst [vmem:[#allocation6 + $0x78] sm:$0xff] %v752_v18 }
 0x3f1   :  { %982 = shalt.err (!%p979_p12)
}
 0x3f2   :  { %s983_s15 = scalar_lea.hbm %s1256_s7, 2048 }
 0x3f3   :  { %p984_p13 = scmp.ne.s32.totalorder %s1256_s7, %s983_s15  ;;  %p987_p0 = scmp.lt.u32.totalorder %s983_s15, %s1256_s7 }
 0x3f5   :  { %p989_p1 = pnand %p987_p0, %p984_p13 }
 0x3f7   :  { %992 = shalt.err (!%p989_p1)
}
 0x3f8   :  { %773 = dma.vmem_to_hbm [thread:$0]  %s768_s10, 2048, %s1256_s7, [#allocation5], %s998_s11, %s998_s11, %s999_s12  }
 0x3f9   :  { %995 = dma.done.wait [#allocation5], 2048  }
 0x3fa   :  { %996 = vsyncadd [#allocation5], 4294965248 }
 0x3fb   :  { %777 = vsyncpa [#allocation4], 1 }
 0x3fc   :  { %778 = vsyncpa [#allocation5], 1 }

</bundles_post_ra>
